<compile_context>
chip_gen: v7x
topology: tpu7x:2x2x1
jax: 0.10.0
libtpu: 0.0.40
codegen_flags: <defaults>
</compile_context>

<pallas_src>
import jax
import jax.numpy as jnp
from jax.experimental import pallas as pl
from jax.experimental.pallas import tpu as pltpu


def _copy_kernel(x_ref, o_ref):
    # Identity copy of the current full-width row block.
    o_ref[...] = x_ref[...]


def _vmem_plan():
    """Generation-aware VMEM plan.

    Returns (vmem_limit_bytes, per_buffer_tile_cap_bytes).  The BlockSpec
    pipeline double-buffers one input and one output block (4 live buffers),
    so the per-buffer cap is ~3/16 of the scoped-VMEM request, leaving ~25%
    headroom for compiler scratch.
      v7x   : 64 MiB/TC physical -> request 32 MiB, ~6 MiB blocks
      v5e/v6e: 128 MiB physical  -> request 64 MiB, ~12 MiB blocks
    """
    try:
        physical = pltpu.get_tpu_info().vmem_capacity_bytes
    except Exception:
        physical = 64 << 20                       # conservative (v7x per-TC)
    vmem_limit = min(physical // 2, 64 << 20)
    tile_cap = (vmem_limit * 3 // 4) // 4
    return vmem_limit, tile_cap


def _pallas_passthrough(x: jax.Array, row_block: int | None = None) -> jax.Array:
    """Tiled, pipelined identity copy via Pallas.  Harness only — NOT part of
    FakeSentenceLoss semantics (forward() returns None and launches nothing).

    Full-width row blocks (last block dim == n, so any column count is legal
    and each block DMA is one contiguous HBM burst), 1-D row grid via
    pl.cdiv (ragged last block masked by Pallas), row blocks sized against
    the chip's actual VMEM.
    """
    m, n = x.shape
    vmem_limit, tile_cap = _vmem_plan()
    bytes_per_row = n * x.dtype.itemsize

    if row_block is not None:
        # Explicit override (used by the harness to force a multi-step grid).
        tm = m if row_block >= m else max(8, (row_block // 8) * 8)
    else:
        rows_fit = max(1, tile_cap // bytes_per_row)
        # Block row-count must be a multiple of 8 (sublane) or equal m.
        tm = m if rows_fit >= m else max(8, (rows_fit // 8) * 8)

    grid = (pl.cdiv(m, tm),)

    return pl.pallas_call(
        _copy_kernel,
        out_shape=jax.ShapeDtypeStruct((m, n), x.dtype),
        grid_spec=pl.GridSpec(
            grid=grid,
            in_specs=[pl.BlockSpec((tm, n), lambda i: (i, 0))],
            out_specs=pl.BlockSpec((tm, n), lambda i: (i, 0)),
        ),
        compiler_params=pltpu.CompilerParams(
            dimension_semantics=("parallel",),   # v7x: two TCs split row blocks
            vmem_limit_bytes=vmem_limit,
        ),
    )(x)


class FakeSentenceLoss:
    """Faithful JAX port of the (empty) PyTorch FakeSentenceLoss module."""

    def __init__(self, arguments=None):
        # Reference __init__ registers no parameters / buffers.
        return

    def forward(self, *inputs):
        # Reference forward returns None for any inputs.
        # No pallas_call on this path — zero bytes moved.
        return None

    __call__ = forward


if __name__ == "__main__":
    key = jax.random.PRNGKey(0)
    k1, k2, k3 = jax.random.split(key, 3)

    # Harness input: 1024 x 512 f32 (2 MiB).  With row_block=128 this gives
    # an 8-step row grid -> real double-buffered pipelining and something for
    # v7x megacore sharding to split.
    scores = jax.random.normal(k1, (1024, 512), dtype=jnp.float32)
    targets = jax.random.normal(k2, (1024, 512), dtype=jnp.float32)

    out = _pallas_passthrough(scores, row_block=128)      # grid = (8,)
    jax.block_until_ready(out)
    assert out.shape == scores.shape
    assert bool(jnp.array_equal(out, scores))

    # Auto-sized path (block picked from the chip's VMEM budget; the whole
    # 2 MiB array fits in one full-width block here).
    out2 = _pallas_passthrough(scores)
    jax.block_until_ready(out2)
    assert bool(jnp.array_equal(out2, scores))

    # Ragged-row case: 136 rows with 64-row blocks -> cdiv grid of 3, last
    # block partial; Pallas masks the out-of-bounds writes.
    ragged = jax.random.normal(k3, (136, 384), dtype=jnp.float32)
    out3 = _pallas_passthrough(ragged, row_block=64)       # grid = (3,)
    jax.block_until_ready(out3)
    assert bool(jnp.array_equal(out3, ragged))

    # Faithful module forward: returns None (matches the PyTorch stub exactly).
    loss_mod = FakeSentenceLoss(arguments=None)
    result = loss_mod(scores, targets)
    assert result is None

    print("KERNEL_OK")
</pallas_src>

<mosaic_0001>
module attributes {stable_mosaic.version = 11 : i64} {
  func.func @_copy_kernel(%arg0: i32, %arg1: memref<128x512xf32, #tpu.memory_space<vmem>>, %arg2: memref<128x512xf32, #tpu.memory_space<vmem>>) attributes {dimension_semantics = [#tpu.dimension_semantics<parallel>], iteration_bounds = array<i64: 8>, scalar_prefetch = 0 : i64, scratch_operands = 0 : i64, tpu.core_type = #tpu.core_type<tc>, window_params = [{transform_indices = @transform_0, window_bounds = array<i64: 128, 512>}, {transform_indices = @transform_1, window_bounds = array<i64: 128, 512>}]} {
    %c0 = arith.constant 0 : index
    %c0_0 = arith.constant 0 : index
    %0 = vector.load %arg1[%c0, %c0_0] : memref<128x512xf32, #tpu.memory_space<vmem>>, vector<128x512xf32>
    %c0_1 = arith.constant 0 : index
    %c0_2 = arith.constant 0 : index
    %1 = vector.load %arg2[%c0_1, %c0_2] : memref<128x512xf32, #tpu.memory_space<vmem>>, vector<128x512xf32>
    tpu.vector_store %arg2[%c0_1, %c0_2], %0 {strides = array<i32>} : memref<128x512xf32, #tpu.memory_space<vmem>>, vector<128x512xf32>,
    return
  }
  func.func @transform_0(%arg0: i32) -> (i32, i32) {
    %c0_i32 = arith.constant 0 : i32
    %c0_i32_0 = arith.constant 0 : i32
    return %arg0, %c0_i32 : i32, i32
  }
  func.func @transform_1(%arg0: i32) -> (i32, i32) {
    %c0_i32 = arith.constant 0 : i32
    %c0_i32_0 = arith.constant 0 : i32
    return %arg0, %c0_i32 : i32, i32
  }
}

</mosaic_0001>

<bundles_post_ra>
// kernel: tpu_custom_call.1
= control target key start
LH: loop header
LB: loop body
LE: loop exit
PB: predicated region body
PF: predicated region fallthrough
CT: control target
= control target key end

     0   :  { %6 = vsyncpa [#allocation3], 0  ;;  %s831_s0 = inlined_call_operand.hbm [shape: f32[1024,512], index: 0, kind: input, shape index: {}]   ;;  %s832_s1 = inlined_call_operand.hbm [shape: f32[1024,512], index: 1, kind: output, shape index: {}]  }
   0x1   :  { %8 = vsyncpa [#allocation3 + $0x1], 0 }
   0x2   :  { %9 = vsyncpa [#allocation4], 0 }
   0x3   :  { %11 = vsyncpa [#allocation4 + $0x1], 0  ;;  %s538_s6 = smov 0   ;;  %s540_s7 = smov 0  }
   0x4   :  { %s542_s8 = smov 0   ;;  %s544_s9 = smov 0  }
   0x5 LB: > { %s559_s10 = sadd.s32 4294967295, %s520_s9   ;;  %s354_s11 = sadd.s32 4294967294, %s520_s9   ;;  %s520_s9 = sphi %s544_s9, %s844_s9   ;;  %s516_s8 = sphi %s542_s8, %s843_s8   ;;  %s512_s7 = sphi %s540_s7, %s842_s7   ;;  %s508_s6 = sphi %s538_s6, %s841_s6  }
   0x6   : > { %s563_s12 = sadd.s32 1, %s520_s9   ;;  %s24_s13 = sadd.s32 1, %s516_s8 }
   0x7   : > { %s21_s14 = ssub.s32 %s520_s9, %s563_s12  ;;  %p31_p0 = scmp.ne.s32.totalorder %s516_s8, %s512_s7 }
   0x8   : > { %p22_p1 = scmp.eq.s32.totalorder %s21_s14, 0  ;;  %p32_p2 = scmp.eq.s32.totalorder %s520_s9, 0 }
   0x9   : > { %p37_p3 = scmp.ne.s32.totalorder %s512_s7, %s508_s6  ;;  %p38_p4 = scmp.eq.s32.totalorder %s559_s10, 0 }
   0xa   : > { %s575_s15 = scalar_select %p22_p1, %s516_s8, %s24_s13  }
   0xb   : > { %p577_p5 = por %p32_p2, %p31_p0  ;;  %p581_p6 = por %p38_p4, %p37_p3 }
   0xc   : > { %p61_p7 = scmp.eq.s32.totalorder %s559_s10, 7  ;;  %p67_p8 = scmp.eq.s32.totalorder %s354_s11, 7 }
   0xd   : > { %p386_p9 = scmp.lt.s32.totalorder %s520_s9, 8  ;;  %s87_s20 = sand.u32 1, %s516_s8  }
   0xe   : > { %p587_p10 = por %p61_p7, %p31_p0  ;;  %p591_p11 = por %p67_p8, %p37_p3 }
   0xf   : > { %s371_s21 = sshll.u32 %s520_s9, 13  ;;  %s357_s22 = sshll.u32 %s87_s20, 9 }
  0x10   : > { %s836_s18 = scalar_select %p587_p10, 1, 0 }
  0x11   : > { %s837_s19 = scalar_select %p591_p11, 1, 0 }
  0x12   : > { %s600_s25 = scalar_lea.hbm %s831_s0, %s371_s21  ;;  %s91_s26 = scalar_lea.vmem [#allocation2], %s357_s22 }
  0x13   : > { %s99_s27 = sshll.u32 %s91_s26, 4  ;;  %p604_p12 = pnand %p386_p9, %p577_p5  ;;  %s608_s27 = int_to_ptr.vmem [resolvable:$true] %s99_s27 }
  0x14   : > { %s610_s29 = scalar_lea.sflag [#allocation3], %s87_s20  ;;  %s424_s30 = scalar_lea.hbm %s600_s25, 8192 }
  0x15   : > { %p425_p13 = scmp.ne.s32.totalorder %s600_s25, %s424_s30  ;;  %p426_p0 = pneg %p604_p12 }
  0x16   : > { %s429_s4 = scalar_lea.hbm %s831_s0, 65536  ;;  %p430_p3 = scmp.lt.u32.totalorder %s600_s25, %s831_s0 }
  0x17   : > { %p427_p1 = pnand %p426_p0, %p425_p13  ;;  %p431_p4 = scmp.lt.u32.totalorder %s429_s4, %s424_s30 }
  0x18   : > { %p433_p7 = scmp.lt.u32.totalorder %s424_s30, %s600_s25 }
  0x19   : > { %p428_p2 = pneg %p427_p1  ;;  %p432_p5 = por %p431_p4, %p430_p3 }
  0x1b   : > { %p434_p8 = por %p433_p7, %p432_p5 }
  0x1d   : > { %p435_p9 = pnand %p434_p8, %p428_p2 }
  0x1f   : > { %438 = shalt.err (!%p435_p9)
}
  0x20   : > { %s439_s13 = scalar_lea.vmem %s608_s27, 8192  ;;  %s522_s14 = smov [#allocation2]  }
  0x21   : > { %p440_p13 = scmp.ne.s32.totalorder %s608_s27, %s439_s13  ;;  %s444_s16 = sshll.u32 %s522_s14, 4  ;;  %s445_s16 = int_to_ptr.vmem [resolvable:$false] %s444_s16 }
  0x22   : > { %s446_s20 = scalar_lea.vmem %s445_s16, 16384  ;;  %p447_p10 = scmp.lt.s32.totalorder %s608_s27, %s445_s16 }
  0x23   : > { %p442_p1 = pnand %p440_p13, %p426_p0  ;;  %p448_p3 = scmp.lt.s32.totalorder %s446_s20, %s439_s13 }
  0x25   : > { %p443_p11 = pneg %p442_p1  ;;  %p449_p4 = por %p448_p3, %p447_p10 }
  0x27   : > { %p450_p5 = pnand %p449_p4, %p443_p11 }
  0x29   : > { %453 = shalt.err (!%p450_p5)
}
  0x2a   : > { %s523_s21 = smov 512   ;;  %s524_s22 = smov 32  }
  0x2b   : > { %381 = dma.hbm_to_vmem [thread:$0]  (!%p604_p12), %s600_s25, 8192, %s608_s27, %s610_s29, %s523_s21, %s523_s21, %s524_s22  }
  0x2c   : > { %p361_p0 = scmp.ge.s32.totalorder %s520_s9, 1  ;;  %p107_p2 = scmp.lt.s32.totalorder %s520_s9, 9 }
  0x2e   : > { %p108_p7 = pnand %p361_p0, %p107_p2 }
  0x2f   : > { %s641_s23 = sand.u32 (!%p108_p7), 1, %s512_s7  }
  0x30   : > { %111 = sbr.rel (%p108_p7) target bundleno = 103 (0x67), region = 24  ;;  %s362_s24 = sshll.u32 (!%p108_p7), %s641_s23, 9 }
  0x31   : > { %s114_s26 = scalar_lea.sflag (!%p108_p7), [#allocation3], %s641_s23  ;;  %s645_s30 = scalar_lea.vmem (!%p108_p7), [#allocation2], %s362_s24 }
  0x37   : > { %499 = dma.done.wait (%p581_p6), %s114_s26, 8192  }
  0x38   : > { %501 = vsyncadd (%p581_p6), %s114_s26, 4294959104  ;;  %v138_v0 = vld [vmem:[%s645_s30] sm:$0xff]  ;;  %v139_v1 = vld [vmem:[%s645_s30 + $0x8] sm:$0xff]  ;;  %s654_s25 = scalar_lea.vmem [#allocation5], %s362_s24  ;;  %s373_s17 = sshll.u32 %s559_s10, 13 }
  0x39   : > { %v140_v2 = vld [vmem:[%s645_s30 + $0x10] sm:$0xff]  ;;  %202 = vst [vmem:[%s654_s25] sm:$0xff] %v138_v0  ;;  %203 = vst [vmem:[%s654_s25 + $0x8] sm:$0xff] %v139_v1  ;;  %v141_v3 = vld [vmem:[%s645_s30 + $0x18] sm:$0xff]  ;;  %s281_s27 = sshll.u32 %s654_s25, 4  ;;  %s775_s29 = scalar_lea.hbm %s832_s1, %s373_s17  ;;  %s777_s27 = int_to_ptr.vmem [resolvable:$true] %s281_s27 }
  0x3a   : > { %204 = vst [vmem:[%s654_s25 + $0x10] sm:$0xff] %v140_v2  ;;  %v142_v4 = vld [vmem:[%s645_s30 + $0x20] sm:$0xff]  ;;  %v143_v5 = vld [vmem:[%s645_s30 + $0x28] sm:$0xff]  ;;  %205 = vst [vmem:[%s654_s25 + $0x18] sm:$0xff] %v141_v3  ;;  %s267_s2 = scalar_lea.sflag [#allocation4], %s641_s23  ;;  %s454_s3 = scalar_lea.vmem %s777_s27, 8192 }
  0x3b   : > { %206 = vst [vmem:[%s654_s25 + $0x20] sm:$0xff] %v142_v4  ;;  %207 = vst [vmem:[%s654_s25 + $0x28] sm:$0xff] %v143_v5  ;;  %v144_v6 = vld [vmem:[%s645_s30 + $0x30] sm:$0xff]  ;;  %v145_v7 = vld [vmem:[%s645_s30 + $0x38] sm:$0xff]  ;;  %p455_p6 = scmp.ne.s32.totalorder %s777_s27, %s454_s3  ;;  %p839_p10 = scmp.ne.s32.totalorder %s836_s18, 0 }
  0x3c   : > { %v146_v8 = vld [vmem:[%s645_s30 + $0x40] sm:$0xff]  ;;  %208 = vst [vmem:[%s654_s25 + $0x30] sm:$0xff] %v144_v6  ;;  %209 = vst [vmem:[%s654_s25 + $0x38] sm:$0xff] %v145_v7  ;;  %v147_v9 = vld [vmem:[%s645_s30 + $0x48] sm:$0xff]  ;;  %s525_s4 = smov [#allocation5]  }
  0x3d   : > { %210 = vst [vmem:[%s654_s25 + $0x40] sm:$0xff] %v146_v8  ;;  %v148_v10 = vld [vmem:[%s645_s30 + $0x50] sm:$0xff]  ;;  %v149_v11 = vld [vmem:[%s645_s30 + $0x58] sm:$0xff]  ;;  %211 = vst [vmem:[%s654_s25 + $0x48] sm:$0xff] %v147_v9  ;;  %p456_p11 = pnand %p455_p6, %p839_p10  ;;  %s458_s5 = sshll.u32 %s525_s4, 4  ;;  %s459_s5 = int_to_ptr.vmem [resolvable:$false] %s458_s5 }
  0x3e   : > { %212 = vst [vmem:[%s654_s25 + $0x50] sm:$0xff] %v148_v10  ;;  %213 = vst [vmem:[%s654_s25 + $0x58] sm:$0xff] %v149_v11  ;;  %v150_v12 = vld [vmem:[%s645_s30 + $0x60] sm:$0xff]  ;;  %v151_v13 = vld [vmem:[%s645_s30 + $0x68] sm:$0xff]  ;;  %s460_s11 = scalar_lea.vmem %s459_s5, 16384  ;;  %p461_p8 = scmp.lt.s32.totalorder %s777_s27, %s459_s5 }
  0x3f   : > { %v152_v14 = vld [vmem:[%s645_s30 + $0x70] sm:$0xff]  ;;  %214 = vst [vmem:[%s654_s25 + $0x60] sm:$0xff] %v150_v12  ;;  %215 = vst [vmem:[%s654_s25 + $0x68] sm:$0xff] %v151_v13  ;;  %v153_v15 = vld [vmem:[%s645_s30 + $0x78] sm:$0xff]  ;;  %p457_p12 = pneg %p456_p11  ;;  %p462_p9 = scmp.lt.s32.totalorder %s460_s11, %s454_s3 }
  0x40   : > { %216 = vst [vmem:[%s654_s25 + $0x70] sm:$0xff] %v152_v14  ;;  %v154_v16 = vld [vmem:[%s645_s30 + $0x80] sm:$0xff]  ;;  %v155_v17 = vld [vmem:[%s645_s30 + $0x88] sm:$0xff]  ;;  %217 = vst [vmem:[%s654_s25 + $0x78] sm:$0xff] %v153_v15 }
  0x41   : > { %218 = vst [vmem:[%s654_s25 + $0x80] sm:$0xff] %v154_v16  ;;  %219 = vst [vmem:[%s654_s25 + $0x88] sm:$0xff] %v155_v17  ;;  %v156_v18 = vld [vmem:[%s645_s30 + $0x90] sm:$0xff]  ;;  %v157_v19 = vld [vmem:[%s645_s30 + $0x98] sm:$0xff]  ;;  %p463_p13 = por %p462_p9, %p461_p8 }
  0x42   : > { %v158_v20 = vld [vmem:[%s645_s30 + $0xa0] sm:$0xff]  ;;  %220 = vst [vmem:[%s654_s25 + $0x90] sm:$0xff] %v156_v18  ;;  %221 = vst [vmem:[%s654_s25 + $0x98] sm:$0xff] %v157_v19  ;;  %v159_v21 = vld [vmem:[%s645_s30 + $0xa8] sm:$0xff] }
  0x43   : > { %222 = vst [vmem:[%s654_s25 + $0xa0] sm:$0xff] %v158_v20  ;;  %v160_v22 = vld [vmem:[%s645_s30 + $0xb0] sm:$0xff]  ;;  %v161_v23 = vld [vmem:[%s645_s30 + $0xb8] sm:$0xff]  ;;  %223 = vst [vmem:[%s654_s25 + $0xa8] sm:$0xff] %v159_v21  ;;  %p464_p1 = pnand %p463_p13, %p457_p12 }
  0x44   : > { %224 = vst [vmem:[%s654_s25 + $0xb0] sm:$0xff] %v160_v22  ;;  %225 = vst [vmem:[%s654_s25 + $0xb8] sm:$0xff] %v161_v23  ;;  %v162_v24 = vld [vmem:[%s645_s30 + $0xc0] sm:$0xff]  ;;  %v163_v25 = vld [vmem:[%s645_s30 + $0xc8] sm:$0xff] }
  0x45   : > { %v164_v26 = vld [vmem:[%s645_s30 + $0xd0] sm:$0xff]  ;;  %226 = vst [vmem:[%s654_s25 + $0xc0] sm:$0xff] %v162_v24  ;;  %227 = vst [vmem:[%s654_s25 + $0xc8] sm:$0xff] %v163_v25  ;;  %v165_v27 = vld [vmem:[%s645_s30 + $0xd8] sm:$0xff] }
  0x46   : > { %228 = vst [vmem:[%s654_s25 + $0xd0] sm:$0xff] %v164_v26  ;;  %v166_v28 = vld [vmem:[%s645_s30 + $0xe0] sm:$0xff]  ;;  %v167_v29 = vld [vmem:[%s645_s30 + $0xe8] sm:$0xff]  ;;  %229 = vst [vmem:[%s654_s25 + $0xd8] sm:$0xff] %v165_v27 }
  0x47   : > { %230 = vst [vmem:[%s654_s25 + $0xe0] sm:$0xff] %v166_v28  ;;  %231 = vst [vmem:[%s654_s25 + $0xe8] sm:$0xff] %v167_v29  ;;  %v168_v30 = vld [vmem:[%s645_s30 + $0xf0] sm:$0xff]  ;;  %v169_v31 = vld [vmem:[%s645_s30 + $0xf8] sm:$0xff] }
  0x48   : > { %v170_v32 = vld [vmem:[%s645_s30 + $0x100] sm:$0xff]  ;;  %232 = vst [vmem:[%s654_s25 + $0xf0] sm:$0xff] %v168_v30  ;;  %233 = vst [vmem:[%s654_s25 + $0xf8] sm:$0xff] %v169_v31  ;;  %v171_v33 = vld [vmem:[%s645_s30 + $0x108] sm:$0xff] }
  0x49   : > { %234 = vst [vmem:[%s654_s25 + $0x100] sm:$0xff] %v170_v32  ;;  %v172_v34 = vld [vmem:[%s645_s30 + $0x110] sm:$0xff]  ;;  %v173_v35 = vld [vmem:[%s645_s30 + $0x118] sm:$0xff]  ;;  %235 = vst [vmem:[%s654_s25 + $0x108] sm:$0xff] %v171_v33 }
  0x4a   : > { %236 = vst [vmem:[%s654_s25 + $0x110] sm:$0xff] %v172_v34  ;;  %237 = vst [vmem:[%s654_s25 + $0x118] sm:$0xff] %v173_v35  ;;  %v174_v36 = vld [vmem:[%s645_s30 + $0x120] sm:$0xff]  ;;  %v175_v37 = vld [vmem:[%s645_s30 + $0x128] sm:$0xff] }
  0x4b   : > { %v176_v38 = vld [vmem:[%s645_s30 + $0x130] sm:$0xff]  ;;  %238 = vst [vmem:[%s654_s25 + $0x120] sm:$0xff] %v174_v36  ;;  %239 = vst [vmem:[%s654_s25 + $0x128] sm:$0xff] %v175_v37  ;;  %v177_v39 = vld [vmem:[%s645_s30 + $0x138] sm:$0xff] }
  0x4c   : > { %240 = vst [vmem:[%s654_s25 + $0x130] sm:$0xff] %v176_v38  ;;  %v178_v40 = vld [vmem:[%s645_s30 + $0x140] sm:$0xff]  ;;  %v179_v41 = vld [vmem:[%s645_s30 + $0x148] sm:$0xff]  ;;  %241 = vst [vmem:[%s654_s25 + $0x138] sm:$0xff] %v177_v39 }
  0x4d   : > { %242 = vst [vmem:[%s654_s25 + $0x140] sm:$0xff] %v178_v40  ;;  %243 = vst [vmem:[%s654_s25 + $0x148] sm:$0xff] %v179_v41  ;;  %v180_v42 = vld [vmem:[%s645_s30 + $0x150] sm:$0xff]  ;;  %v181_v43 = vld [vmem:[%s645_s30 + $0x158] sm:$0xff] }
  0x4e   : > { %v182_v44 = vld [vmem:[%s645_s30 + $0x160] sm:$0xff]  ;;  %244 = vst [vmem:[%s654_s25 + $0x150] sm:$0xff] %v180_v42  ;;  %245 = vst [vmem:[%s654_s25 + $0x158] sm:$0xff] %v181_v43  ;;  %v183_v45 = vld [vmem:[%s645_s30 + $0x168] sm:$0xff] }
  0x4f   : > { %246 = vst [vmem:[%s654_s25 + $0x160] sm:$0xff] %v182_v44  ;;  %v184_v46 = vld [vmem:[%s645_s30 + $0x170] sm:$0xff]  ;;  %v185_v47 = vld [vmem:[%s645_s30 + $0x178] sm:$0xff]  ;;  %247 = vst [vmem:[%s654_s25 + $0x168] sm:$0xff] %v183_v45 }
  0x50   : > { %248 = vst [vmem:[%s654_s25 + $0x170] sm:$0xff] %v184_v46  ;;  %249 = vst [vmem:[%s654_s25 + $0x178] sm:$0xff] %v185_v47  ;;  %v186_v48 = vld [vmem:[%s645_s30 + $0x180] sm:$0xff]  ;;  %v187_v49 = vld [vmem:[%s645_s30 + $0x188] sm:$0xff] }
  0x51   : > { %v188_v50 = vld [vmem:[%s645_s30 + $0x190] sm:$0xff]  ;;  %250 = vst [vmem:[%s654_s25 + $0x180] sm:$0xff] %v186_v48  ;;  %251 = vst [vmem:[%s654_s25 + $0x188] sm:$0xff] %v187_v49  ;;  %v189_v51 = vld [vmem:[%s645_s30 + $0x198] sm:$0xff] }
  0x52   : > { %252 = vst [vmem:[%s654_s25 + $0x190] sm:$0xff] %v188_v50  ;;  %v190_v52 = vld [vmem:[%s645_s30 + $0x1a0] sm:$0xff]  ;;  %v191_v53 = vld [vmem:[%s645_s30 + $0x1a8] sm:$0xff]  ;;  %253 = vst [vmem:[%s654_s25 + $0x198] sm:$0xff] %v189_v51 }
  0x53   : > { %254 = vst [vmem:[%s654_s25 + $0x1a0] sm:$0xff] %v190_v52  ;;  %255 = vst [vmem:[%s654_s25 + $0x1a8] sm:$0xff] %v191_v53  ;;  %v192_v54 = vld [vmem:[%s645_s30 + $0x1b0] sm:$0xff]  ;;  %v193_v55 = vld [vmem:[%s645_s30 + $0x1b8] sm:$0xff] }
  0x54   : > { %v194_v56 = vld [vmem:[%s645_s30 + $0x1c0] sm:$0xff]  ;;  %256 = vst [vmem:[%s654_s25 + $0x1b0] sm:$0xff] %v192_v54  ;;  %257 = vst [vmem:[%s654_s25 + $0x1b8] sm:$0xff] %v193_v55  ;;  %v195_v57 = vld [vmem:[%s645_s30 + $0x1c8] sm:$0xff] }
  0x55   : > { %258 = vst [vmem:[%s654_s25 + $0x1c0] sm:$0xff] %v194_v56  ;;  %v196_v58 = vld [vmem:[%s645_s30 + $0x1d0] sm:$0xff]  ;;  %v197_v59 = vld [vmem:[%s645_s30 + $0x1d8] sm:$0xff]  ;;  %259 = vst [vmem:[%s654_s25 + $0x1c8] sm:$0xff] %v195_v57 }
  0x56   : > { %260 = vst [vmem:[%s654_s25 + $0x1d0] sm:$0xff] %v196_v58  ;;  %261 = vst [vmem:[%s654_s25 + $0x1d8] sm:$0xff] %v197_v59  ;;  %v198_v60 = vld [vmem:[%s645_s30 + $0x1e0] sm:$0xff]  ;;  %v199_v61 = vld [vmem:[%s645_s30 + $0x1e8] sm:$0xff] }
  0x57   : > { %v200_v62 = vld [vmem:[%s645_s30 + $0x1f0] sm:$0xff]  ;;  %262 = vst [vmem:[%s654_s25 + $0x1e0] sm:$0xff] %v198_v60  ;;  %263 = vst [vmem:[%s654_s25 + $0x1e8] sm:$0xff] %v199_v61  ;;  %v201_v63 = vld [vmem:[%s645_s30 + $0x1f8] sm:$0xff] }
  0x58   : > { %264 = vst [vmem:[%s654_s25 + $0x1f0] sm:$0xff] %v200_v62  ;;  %265 = vst [vmem:[%s654_s25 + $0x1f8] sm:$0xff] %v201_v63 }
  0x59   : > { %467 = shalt.err (!%p464_p1)
}
  0x5a   : > { %s468_s13 = scalar_lea.hbm %s775_s29, 8192  ;;  %s472_s20 = scalar_lea.hbm %s832_s1, 65536 }
  0x5b   : > { %p469_p3 = scmp.ne.s32.totalorder %s775_s29, %s468_s13  ;;  %p473_p0 = scmp.lt.u32.totalorder %s775_s29, %s832_s1 }
  0x5c   : > { %p474_p2 = scmp.lt.u32.totalorder %s472_s20, %s468_s13  ;;  %p476_p6 = scmp.lt.u32.totalorder %s468_s13, %s775_s29 }
  0x5d   : > { %p470_p4 = pnand %p469_p3, %p839_p10 }
  0x5e   : > { %p475_p7 = por %p474_p2, %p473_p0 }
  0x5f   : > { %p471_p5 = pneg %p470_p4 }
  0x60   : > { %p477_p11 = por %p476_p6, %p475_p7 }
  0x62   : > { %p478_p12 = pnand %p477_p11, %p471_p5 }
  0x64   : > { %481 = shalt.err (!%p478_p12)
}
  0x65   : > { %s526_s24 = smov 512   ;;  %s527_s26 = smov 32  }
  0x66   : > { %376 = dma.vmem_to_hbm [thread:$0]  (%p839_p10), %s777_s27, 8192, %s775_s29, %s267_s2, %s526_s24, %s526_s24, %s527_s26  }
  0x67 PF: > { %p387_p8 = scmp.ge.s32.totalorder %s520_s9, 2  ;;  %s296_s30 = sand.u32 1, %s508_s6  }
  0x68   : > { %p840_p9 = scmp.ne.s32.totalorder %s837_s19, 0  ;;  %s297_s25 = scalar_lea.sflag [#allocation4], %s296_s30 }
  0x6a   : > { %p383_p13 = pnand %p387_p8, %p840_p9 }
  0x6c   : > { %503 = dma.done.wait (!%p383_p13), %s297_s25, 8192  }
  0x6d   : > { %505 = vsyncadd (!%p383_p13), %s297_s25, 4294959104  ;;  %p14_p1 = scmp.ge.s32.totalorder %s563_s12, 10   ;;  %s841_s6 = smov %s512_s7 }
  0x6e   : > { %s842_s7 = smov %s516_s8  ;;  %s843_s8 = smov %s575_s15 }
  0x6f   : > { %s844_s9 = smov %s563_s12  ;;  %16 = sbr.rel (!%p14_p1) target bundleno = 5 (0x5), region = 69 }
  0x76   :  { %302 = vsyncpa [#allocation3], 1 }
  0x77   :  { %304 = vsyncpa [#allocation3 + $0x1], 1 }
  0x78   :  { %305 = vsyncpa [#allocation4], 1 }
  0x79   :  { %307 = vsyncpa [#allocation4 + $0x1], 1 }

</bundles_post_ra>
